<compile_context>
chip_gen: v7x
topology: tpu7x:2x2x1
jax: 0.10.0
libtpu: 0.0.40
codegen_flags: <defaults>
</compile_context>

<pallas_src>
import functools

import jax
import jax.numpy as jnp
from jax.experimental import pallas as pl
from jax.experimental.pallas import tpu as pltpu

SIZE = 16  # stand-in for the undefined global `size` in the PyTorch module


def _cat_slice_cat_kernel(*refs, col_widths, size):
    """Builds one output row-block = [x_0 | x_1 | ... | prefix(size)].

    refs = (*input_refs, out_ref).  Every input tile is loaded once, the
    `size`-wide prefix is re-sliced from the already-loaded values (no second
    VMEM read), and the result is written with a single full-width store.
    """
    in_refs = refs[:-1]
    o_ref = refs[-1]

    # Load each input tile exactly once.
    vals = [r[...] for r in in_refs]

    # t1 pieces followed by the t3 prefix pieces (prefix may span inputs).
    pieces = list(vals)
    remaining = size
    for v, w in zip(vals, col_widths):
        if remaining <= 0:
            break
        take = min(w, remaining)
        pieces.append(v if take == w else v[:, :take])
        remaining -= take

    if len(pieces) == 1:
        o_ref[...] = pieces[0]
    else:
        o_ref[...] = jnp.concatenate(pieces, axis=-1)


def _choose_row_tile(b, c_total, out_cols, itemsize):
    """Row-tile size from an explicit VMEM budget, sublane-pack aligned."""
    pack = max(8, 32 // itemsize)  # f32 -> 8, bf16 -> 16, int8 -> 32
    if b <= pack:
        return b  # single tiny block; equals full batch dim (always legal)

    bytes_per_row = (c_total + out_cols) * itemsize  # inputs + output per row
    vmem_budget = 24 * 1024 * 1024  # conservative across v5e/v6e/v7x
    tm = max(pack, vmem_budget // (2 * bytes_per_row))  # x2: double buffering
    tm = min(tm, b)

    # Prefer >= 2 grid blocks (v7x dual-TC sharding + read/write pipelining)
    # as long as each block keeps >= 256 rows.
    if 2 * tm > b:
        if b >= 4 * 256:
            tm = b // 4
        elif b >= 2 * 256:
            tm = b // 2

    tm = max(pack, (tm // pack) * pack)
    return tm


def cat_slice_cat(tensors, size=SIZE):
    """JAX/Pallas equivalent of Model.forward(input_tensors)."""
    assert len(tensors) >= 1
    b = tensors[0].shape[0]
    dtype = tensors[0].dtype
    for t in tensors:
        assert t.ndim == 2 and t.shape[0] == b and t.dtype == dtype

    col_widths = tuple(int(t.shape[1]) for t in tensors)
    c_total = sum(col_widths)
    # PyTorch slicing clamps an out-of-range stop index instead of erroring.
    size = int(max(0, min(size, c_total)))
    out_cols = c_total + size
    itemsize = jnp.dtype(dtype).itemsize

    tm = _choose_row_tile(b, c_total, out_cols, itemsize)
    grid = (pl.cdiv(b, tm),)

    # VMEM limit consistent with the chosen (double-buffered) tile + headroom.
    block_bytes = tm * (c_total + out_cols) * itemsize
    vmem_limit = int(2 * block_bytes + 8 * 1024 * 1024)
    vmem_limit = max(16 * 1024 * 1024, min(vmem_limit, 48 * 1024 * 1024))

    kernel = functools.partial(
        _cat_slice_cat_kernel, col_widths=col_widths, size=size
    )

    in_specs = [pl.BlockSpec((tm, w), lambda i: (i, 0)) for w in col_widths]
    out_specs = pl.BlockSpec((tm, out_cols), lambda i: (i, 0))

    cost = pl.CostEstimate(
        flops=0,
        transcendentals=0,
        bytes_accessed=b * (c_total + out_cols) * itemsize,
    )

    return pl.pallas_call(
        kernel,
        out_shape=jax.ShapeDtypeStruct((b, out_cols), dtype),
        grid=grid,
        in_specs=in_specs,
        out_specs=out_specs,
        compiler_params=pltpu.CompilerParams(
            dimension_semantics=("parallel",),
            vmem_limit_bytes=vmem_limit,
        ),
        cost_estimate=cost,
    )(*tensors)


if __name__ == "__main__":
    key = jax.random.PRNGKey(0)
    k1, k2 = jax.random.split(key)

    # Small shapes: batch=4, two 32-wide feature tensors, SIZE=16 prefix appended.
    x1 = jax.random.normal(k1, (4, 32), dtype=jnp.float32)
    x2 = jax.random.normal(k2, (4, 32), dtype=jnp.float32)

    # Multi-input case (torch.cat over a list of tensors).
    out = jax.block_until_ready(cat_slice_cat([x1, x2], size=SIZE))
    t1 = jnp.concatenate([x1, x2], axis=1)
    ref = jnp.concatenate([t1, t1[:, :SIZE]], axis=1)
    assert out.shape == (4, 32 + 32 + SIZE), out.shape
    assert jnp.allclose(out, ref), "mismatch vs reference (2 inputs)"

    # Single-input case (matches `input_tensors = 1` in the original source).
    out1 = jax.block_until_ready(cat_slice_cat([x1], size=SIZE))
    ref1 = jnp.concatenate([x1, x1[:, :SIZE]], axis=1)
    assert out1.shape == (4, 32 + SIZE), out1.shape
    assert jnp.allclose(out1, ref1), "mismatch vs reference (1 input)"

    print("KERNEL_OK")
</pallas_src>

<mosaic_0001>
module attributes {stable_mosaic.version = 11 : i64} {
  func.func @_cat_slice_cat_kernel(%arg0: i32, %arg1: memref<4x32xf32, #tpu.memory_space<vmem>>, %arg2: memref<4x32xf32, #tpu.memory_space<vmem>>, %arg3: memref<4x80xf32, #tpu.memory_space<vmem>>) attributes {dimension_semantics = [#tpu.dimension_semantics<parallel>], iteration_bounds = array<i64: 1>, scalar_prefetch = 0 : i64, scratch_operands = 0 : i64, tpu.core_type = #tpu.core_type<tc>, window_params = [{transform_indices = @transform_0, window_bounds = array<i64: 4, 32>}, {transform_indices = @transform_1, window_bounds = array<i64: 4, 32>}, {transform_indices = @transform_2, window_bounds = array<i64: 4, 80>}]} {
    %c0 = arith.constant 0 : index
    %c0_0 = arith.constant 0 : index
    %0 = vector.load %arg1[%c0, %c0_0] : memref<4x32xf32, #tpu.memory_space<vmem>>, vector<4x32xf32>
    %c0_1 = arith.constant 0 : index
    %c0_2 = arith.constant 0 : index
    %1 = vector.load %arg2[%c0_1, %c0_2] : memref<4x32xf32, #tpu.memory_space<vmem>>, vector<4x32xf32>
    %2 = vector.extract_strided_slice %0 {offsets = [0, 0], sizes = [4, 16], strides = [1, 1]} : vector<4x32xf32> to vector<4x16xf32>
    %3 = tpu.concatenate %0, %1, %2 in 1 : vector<4x32xf32>, vector<4x32xf32>, vector<4x16xf32> -> vector<4x80xf32>
    %c0_3 = arith.constant 0 : index
    %c0_4 = arith.constant 0 : index
    %4 = vector.load %arg3[%c0_3, %c0_4] : memref<4x80xf32, #tpu.memory_space<vmem>>, vector<4x80xf32>
    tpu.vector_store %arg3[%c0_3, %c0_4], %3 {strides = array<i32>} : memref<4x80xf32, #tpu.memory_space<vmem>>, vector<4x80xf32>,
    return
  }
  func.func @transform_0(%arg0: i32) -> (i32, i32) {
    %c0_i32 = arith.constant 0 : i32
    %c0_i32_0 = arith.constant 0 : i32
    return %arg0, %c0_i32 : i32, i32
  }
  func.func @transform_1(%arg0: i32) -> (i32, i32) {
    %c0_i32 = arith.constant 0 : i32
    %c0_i32_0 = arith.constant 0 : i32
    return %arg0, %c0_i32 : i32, i32
  }
  func.func @transform_2(%arg0: i32) -> (i32, i32) {
    %c0_i32 = arith.constant 0 : i32
    %c0_i32_0 = arith.constant 0 : i32
    return %arg0, %c0_i32 : i32, i32
  }
}

</mosaic_0001>

<bundles_post_ra>
// kernel: tpu_custom_call.1
= control target key start
LH: loop header
LB: loop body
LE: loop exit
PB: predicated region body
PF: predicated region fallthrough
CT: control target
= control target key end

     0   :  { %7 = vsyncpa [#allocation3], 0  ;;  %s201_s0 = inlined_call_operand.hbm [shape: f32[4,32], index: 0, kind: input, shape index: {}]   ;;  %s202_s1 = inlined_call_operand.hbm [shape: f32[4,32], index: 1, kind: input, shape index: {}]   ;;  %s203_s2 = inlined_call_operand.hbm [shape: f32[4,80], index: 2, kind: output, shape index: {}]  }
   0x1   :  { %8 = vsyncpa [#allocation6], 0 }
   0x2   :  { %9 = vsyncpa [#allocation4], 0  ;;  %s145_s9 = smov [#allocation2]   ;;  %s146_s11 = smov [#allocation5]  }
   0x3   :  { %s16_s10 = sshll.u32 %s145_s9, 4  ;;  %s26_s12 = sshll.u32 %s146_s11, 4  ;;  %s17_s10 = int_to_ptr.vmem [resolvable:$true] %s16_s10  ;;  %s27_s12 = int_to_ptr.vmem [resolvable:$true] %s26_s12 }
   0x4   :  { %s73_s15 = scalar_lea.hbm %s201_s0, 64 }
   0x5   :  { %p74_p0 = scmp.ne.s32.totalorder %s201_s0, %s73_s15  ;;  %p77_p1 = scmp.lt.u32.totalorder %s73_s15, %s201_s0 }
   0x7   :  { %p79_p2 = pnand %p77_p1, %p74_p0 }
   0x9   :  { %82 = shalt.err (!%p79_p2)
}
   0xa   :  { %s83_s20 = scalar_lea.vmem %s17_s10, 64  ;;  %p88_p4 = scmp.lt.s32.totalorder %s17_s10, %s17_s10 }
   0xb   :  { %p84_p3 = scmp.ne.s32.totalorder %s17_s10, %s83_s20  ;;  %p89_p5 = scmp.lt.s32.totalorder %s83_s20, %s83_s20 }
   0xd   :  { %p90_p6 = por %p89_p5, %p88_p4 }
   0xf   :  { %p91_p7 = pnand %p90_p6, %p84_p3 }
  0x11   :  { %94 = shalt.err (!%p91_p7)
}
  0x12   :  { %19 = dma.hbm_to_vmem [thread:$0]  %s201_s0, 64, %s17_s10, [#allocation3]  }
  0x13   :  { %s95_s25 = scalar_lea.hbm %s202_s1, 64 }
  0x14   :  { %p96_p8 = scmp.ne.s32.totalorder %s202_s1, %s95_s25  ;;  %p99_p9 = scmp.lt.u32.totalorder %s95_s25, %s202_s1 }
  0x16   :  { %p101_p10 = pnand %p99_p9, %p96_p8 }
  0x18   :  { %104 = shalt.err (!%p101_p10)
}
  0x19   :  { %s105_s30 = scalar_lea.vmem %s27_s12, 64  ;;  %p110_p12 = scmp.lt.s32.totalorder %s27_s12, %s27_s12 }
  0x1a   :  { %p106_p11 = scmp.ne.s32.totalorder %s27_s12, %s105_s30  ;;  %p111_p13 = scmp.lt.s32.totalorder %s105_s30, %s105_s30 }
  0x1c   :  { %p112_p0 = por %p111_p13, %p110_p12 }
  0x1e   :  { %p113_p1 = pnand %p112_p0, %p106_p11 }
  0x20   :  { %116 = shalt.err (!%p113_p1)
}
  0x21   :  { %29 = dma.hbm_to_vmem [thread:$0]  %s202_s1, 64, %s27_s12, [#allocation6]  }
  0x22   :  { %139 = dma.done.wait [#allocation3], 64  }
  0x23   :  { %140 = vsyncadd [#allocation3], 4294967232 }
  0x24   :  { %141 = dma.done.wait [#allocation6], 64  }
  0x25   :  { %142 = vsyncadd [#allocation6], 4294967232  ;;  %v37_v0 = vld [vmem:[#allocation5] sm:$0xf]  ;;  %s147_s4 = smov 32   ;;  %s148_s5 = smov 64  }
  0x26   :  { %39 = vrot.lane.b32.xlu0 %v37_v0, %s147_s4  ;;  %v36_v1 = vld [vmem:[#allocation2] sm:$0xf]  ;;  %vm46_vm0 = vcmask 261120   ;;  %s149_s6 = smov [#allocation7]   ;;  %vm48_vm1 = vcmask 523264   ;;  %vm50_vm2 = vcmask 650240  }
  0x27   :  { %s58_s7 = sshll.u32 %s149_s6, 4  ;;  %s59_s7 = int_to_ptr.vmem [resolvable:$true] %s58_s7 }
  0x28   :  { %s117_s1 = scalar_lea.vmem %s59_s7, 64  ;;  %p122_p3 = scmp.lt.s32.totalorder %s59_s7, %s59_s7 }
  0x29   :  { %p118_p2 = scmp.ne.s32.totalorder %s59_s7, %s117_s1  ;;  %p123_p4 = scmp.lt.s32.totalorder %s117_s1, %s117_s1 }
  0x2a   :  { %43 = vrot.lane.b32.xlu0 %v36_v1, %s148_s5 }
  0x2b   :  { %p124_p5 = por %p123_p4, %p122_p3 }
  0x2d   :  { %p125_p6 = pnand %p124_p5, %p118_p2 }
  0x98   :  { %v40_v2 = vpop.permute.xlu0 %39 }
  0x99   :  { %v47_v3 = vsel %vm46_vm0, %v36_v1, %v40_v2 }
  0x9c   :  { %v44_v4 = vpop.permute.xlu0 %43 }
  0x9d   :  { %v49_v5 = vsel %vm48_vm1, %v47_v3, %v44_v4 }
  0x9e   :  { %51 = vst.msk [vmem:[#allocation7] sm:$0xf] %vm50_vm2, %v49_v5 }
  0x9f   :  { %128 = shalt.err (!%p125_p6)
}
  0xa0   :  { %s129_s10 = scalar_lea.hbm %s203_s2, 64 }
  0xa1   :  { %p130_p7 = scmp.ne.s32.totalorder %s203_s2, %s129_s10  ;;  %p133_p8 = scmp.lt.u32.totalorder %s129_s10, %s203_s2 }
  0xa3   :  { %p135_p9 = pnand %p133_p8, %p130_p7 }
  0xa5   :  { %138 = shalt.err (!%p135_p9)
}
  0xa6   :  { %61 = dma.vmem_to_hbm [thread:$0]  %s59_s7, 64, %s203_s2, [#allocation4]  }
  0xa7   :  { %143 = dma.done.wait [#allocation4], 64  }
  0xa8   :  { %144 = vsyncadd [#allocation4], 4294967232 }
  0xa9   :  { %65 = vsyncpa [#allocation3], 1 }
  0xaa   :  { %66 = vsyncpa [#allocation6], 1 }
  0xab   :  { %67 = vsyncpa [#allocation4], 1 }

</bundles_post_ra>
